<compile_context>
chip_gen: v5e
topology: v5e:2x2
jax: 0.10.0
libtpu: 0.0.40
codegen_flags: <defaults>
</compile_context>

<pallas_src>
import jax
import jax.numpy as jnp
from jax.experimental import pallas as pl
from jax.experimental.pallas import tpu as pltpu


def _round_up(x, m):
    return (x + m - 1) // m * m


def _balanced_tile(dim, cap, granule):
    """Split `dim` (a multiple of `granule`) into few blocks of size <= cap.

    Prefers an exact-divisor tile in [cap/2, cap] (zero padded HBM bytes); else
    falls back to the fewest near-equal blocks (padding < one block). Never
    degenerates to a tiny tile the way shrink-until-divides does.
    Returns (tile, padded_dim) with tile | padded_dim.
    """
    cap = max(granule, cap - cap % granule)
    if dim <= cap:
        return dim, dim
    t = cap
    while t >= max(granule, cap // 2):
        if dim % t == 0:
            return t, dim
        t -= granule
    n = -(-dim // cap)
    tile = _round_up(-(-dim // n), granule)
    return tile, _round_up(dim, tile)


def _pooler_kernel_single_k(x_ref, w_ref, b_ref, o_ref):
    # x_ref: (tm, K) first-token activations; w_ref: (tn, K) PyTorch (out, in)
    # layout; b_ref: (1, tn); o_ref: (tm, tn).
    # Single contraction step: no accumulator scratch, no pl.when; fused
    # matmul + bias + tanh, one store per output tile.
    y = jax.lax.dot_general(
        x_ref[...],
        w_ref[...],
        dimension_numbers=(((1,), (1,)), ((), ())),  # contract both last dims
        preferred_element_type=jnp.float32,
    )
    y = y + b_ref[...].astype(jnp.float32)
    o_ref[...] = jnp.tanh(y).astype(o_ref.dtype)  # tanh -> EUP slot


def _pooler_kernel_multi_k(x_ref, w_ref, b_ref, o_ref, acc_ref):
    k = pl.program_id(2)
    nk = pl.num_programs(2)
    part = jax.lax.dot_general(
        x_ref[...],
        w_ref[...],
        dimension_numbers=(((1,), (1,)), ((), ())),
        preferred_element_type=jnp.float32,
    )

    @pl.when(k == 0)
    def _store():  # store (not zero-init + add): saves one VMEM round trip
        acc_ref[...] = part

    @pl.when(jnp.logical_and(k > 0, k < nk - 1))
    def _accum():
        acc_ref[...] += part

    @pl.when(k == nk - 1)
    def _finalize():  # fold the last partial product straight into the epilogue
        y = acc_ref[...] + part + b_ref[...].astype(jnp.float32)
        o_ref[...] = jnp.tanh(y).astype(o_ref.dtype)


def pooler_forward(hidden_states, weight, bias, *, force_pallas=False):
    """hidden_states: (B, S, H); weight: (H_out, H_in) PyTorch layout; bias: (H_out,)."""
    B, S, H = hidden_states.shape
    Hout, Hin = weight.shape
    assert Hin == H, "weight in_features must match hidden size"

    # Tiny-problem dispatch: below ~one MXU tile of work the pallas_call launch
    # overhead dominates; plain XLA fuses slice+matmul+bias+tanh.
    if not force_pallas and (B * Hout < 128 * 128 or Hin < 128):
        x0 = hidden_states[:, 0, :]
        y = jax.lax.dot_general(
            x0, weight, (((1,), (1,)), ((), ())), preferred_element_type=jnp.float32
        ) + bias.astype(jnp.float32)
        return jnp.tanh(y).astype(hidden_states.dtype)

    xb = jnp.dtype(hidden_states.dtype).itemsize
    wb = jnp.dtype(weight.dtype).itemsize
    bb = jnp.dtype(bias.dtype).itemsize
    ob = xb

    # Generation-aware VMEM budget (v5e/v6e: 128 MiB, v7x: 64 MiB physical).
    try:
        vmem_cap = int(pltpu.get_tpu_info().vmem_capacity_bytes)
    except Exception:
        vmem_cap = 64 << 20  # conservative (v7x-sized) fallback
    budget = max(int(vmem_cap * 0.45), 8 << 20)

    # ---- tile selection ----------------------------------------------------
    # K (contraction): prefer the full hidden size so the K grid collapses and
    # the single-K fast path (no accumulator) is taken.
    tk_cap = 4096 if vmem_cap > (96 << 20) else 2048
    Kp0 = _round_up(Hin, 128)
    tk, Kp = _balanced_tile(Kp0, tk_cap, 128)
    n_k = Kp // tk
    multi_k = n_k > 1

    # N (output columns): weight tile gets ~half the budget; split into >= 2
    # blocks whenever possible so v7x's second TensorCore gets work (neutral on
    # single-TC v5e/v6e: same total weight bytes, one extra grid step).
    Np0 = _round_up(Hout, 128)
    tn_cap = max(128, (budget // 2) // (2 * tk * wb) // 128 * 128)
    if Np0 >= 256:
        tn_cap = min(tn_cap, _round_up(Np0 // 2, 128))
    tn, Np = _balanced_tile(Np0, tn_cap, 128)
    n_j = Np // tn

    # B (rows): whatever budget remains after the weight tile. Prefer a single
    # B block so the (dominant) weight matrix is streamed from HBM exactly once.
    Bp0 = _round_up(B, 8)
    w_tile_bytes = 2 * tn * tk * wb
    bias_tile_bytes = 2 * tn * bb
    per_row = 2 * tk * xb + 2 * tn * ob + (4 * tn if multi_k else 0)
    tm_cap = max(8, (budget - w_tile_bytes - bias_tile_bytes) // per_row // 8 * 8)
    tm, Bp = _balanced_tile(Bp0, tm_cap, 8)
    n_i = Bp // tm

    # ---- operand staging -----------------------------------------------------
    # Aligned fast path: view (B, S, H) as (B, S*H) (zero-copy reshape); the x
    # BlockSpec only ever pulls columns [0, Hin) == the seq==0 token, so the
    # first-token slice is fused into the kernel's DMA.
    x_aligned = (Bp == B) and (Kp == Hin)
    if x_aligned:
        assert Kp == Hin <= S * H  # K blocks never reach token-1 data
        x2d = hidden_states.reshape(B, S * H)
    else:
        # Unaligned / toy shapes: slice + zero-pad the small 2D operand.
        x2d = jnp.pad(hidden_states[:, 0, :], ((0, Bp - B), (0, Kp - Hin)))

    if (Np, Kp) == (Hout, Hin):
        w_p, b_p = weight, bias
    else:
        w_p = jnp.pad(weight, ((0, Np - Hout), (0, Kp - Hin)))
        b_p = jnp.pad(bias, (0, Np - Hout))
    b2d = b_p.reshape(1, Np)

    # ---- pallas_call ---------------------------------------------------------
    vmem_use = (
        w_tile_bytes
        + bias_tile_bytes
        + 2 * tm * tk * xb
        + 2 * tm * tn * ob
        + (tm * tn * 4 if multi_k else 0)
    )
    vmem_limit = max(8 << 20, min(int(vmem_cap * 0.9), vmem_use + (4 << 20)))

    cost = pl.CostEstimate(
        flops=2 * Bp * Kp * Np,
        transcendentals=Bp * Np,
        bytes_accessed=(
            Bp * Kp * xb * (n_j if multi_k else 1)  # x re-read per N block only if K is tiled
            + Np * Kp * wb * n_i                    # weight re-read per B block (usually 1)
            + Np * bb
            + Bp * Np * ob
        ),
    )

    if multi_k:
        grid = (n_i, n_j, n_k)
        grid_spec = pltpu.PrefetchScalarGridSpec(
            num_scalar_prefetch=0,
            grid=grid,
            in_specs=[
                # x: first-token columns of the (possibly flattened) activations.
                pl.BlockSpec((tm, tk), lambda i, j, k: (i, k)),
                # weight, PyTorch (out, in) layout.
                pl.BlockSpec((tn, tk), lambda i, j, k: (j, k)),
                # bias tile matched to the output column tile.
                pl.BlockSpec((1, tn), lambda i, j, k: (0, j)),
            ],
            out_specs=pl.BlockSpec((tm, tn), lambda i, j, k: (i, j)),
            scratch_shapes=[pltpu.VMEM((tm, tn), jnp.float32)],
        )
        kernel = _pooler_kernel_multi_k
        dims = ("parallel", "parallel", "arbitrary")
    else:
        grid = (n_i, n_j)
        grid_spec = pltpu.PrefetchScalarGridSpec(
            num_scalar_prefetch=0,
            grid=grid,
            in_specs=[
                pl.BlockSpec((tm, tk), lambda i, j: (i, 0)),
                pl.BlockSpec((tn, tk), lambda i, j: (j, 0)),
                pl.BlockSpec((1, tn), lambda i, j: (0, j)),
            ],
            out_specs=pl.BlockSpec((tm, tn), lambda i, j: (i, j)),
            scratch_shapes=[],
        )
        kernel = _pooler_kernel_single_k
        dims = ("parallel", "parallel")

    out = pl.pallas_call(
        kernel,
        out_shape=jax.ShapeDtypeStruct((Bp, Np), hidden_states.dtype),
        grid_spec=grid_spec,
        compiler_params=pltpu.CompilerParams(
            dimension_semantics=dims,
            vmem_limit_bytes=vmem_limit,
        ),
        cost_estimate=cost,
    )(x2d, w_p, b2d)

    if (Bp, Np) != (B, Hout):
        out = out[:B, :Hout]
    return out


if __name__ == "__main__":
    key = jax.random.PRNGKey(0)
    k1, k2, k3, k4 = jax.random.split(key, 4)

    def ref_pooler(hs, w, b):
        return jnp.tanh(jnp.dot(hs[:, 0, :], w.T, precision="highest") + b)

    # 1) Demo config implied by the module: emb_dim_encoder=32, batch=2, seq=8.
    #    (Force the Pallas path so the kernel itself is exercised; the padded
    #    lane-dense tile path handles the unaligned H=32.)
    B, S, H = 2, 8, 32
    hidden_states = jax.random.normal(k1, (B, S, H), dtype=jnp.float32)
    weight = jax.random.normal(k2, (H, H), dtype=jnp.float32) * 0.02  # (out, in)
    bias = jax.random.normal(k3, (H,), dtype=jnp.float32) * 0.02

    out = jax.block_until_ready(pooler_forward(hidden_states, weight, bias, force_pallas=True))
    assert out.shape == (B, H)
    assert jnp.allclose(out, ref_pooler(hidden_states, weight, bias), atol=5e-3, rtol=5e-3)

    # 2) Aligned shape exercising the fused first-token slice (zero-copy reshape,
    #    single-K fast path, N split into two blocks for v7x's two TensorCores).
    B2, S2, H2 = 64, 8, 256
    hs2 = jax.random.normal(k4, (B2, S2, H2), dtype=jnp.float32)
    w2 = jax.random.normal(k2, (H2, H2), dtype=jnp.float32) * 0.02
    b2 = jax.random.normal(k3, (H2,), dtype=jnp.float32) * 0.02

    out2 = jax.block_until_ready(pooler_forward(hs2, w2, b2, force_pallas=True))
    assert out2.shape == (B2, H2)
    assert jnp.allclose(out2, ref_pooler(hs2, w2, b2), atol=5e-3, rtol=5e-3)

    print("KERNEL_OK")
</pallas_src>

<mosaic_0001>
module attributes {stable_mosaic.version = 11 : i64} {
  func.func @_pooler_kernel_single_k(%arg0: i32, %arg1: i32, %arg2: memref<8x128xf32, #tpu.memory_space<vmem>>, %arg3: memref<128x128xf32, #tpu.memory_space<vmem>>, %arg4: memref<1x128xf32, #tpu.memory_space<vmem>>, %arg5: memref<8x128xf32, #tpu.memory_space<vmem>>) attributes {dimension_semantics = [#tpu.dimension_semantics<parallel>, #tpu.dimension_semantics<parallel>], iteration_bounds = array<i64: 1, 1>, scalar_prefetch = 0 : i64, scratch_operands = 0 : i64, tpu.core_type = #tpu.core_type<tc>, window_params = [{transform_indices = @transform_0, window_bounds = array<i64: 8, 128>}, {transform_indices = @transform_1, window_bounds = array<i64: 128, 128>}, {transform_indices = @transform_2, window_bounds = array<i64: 1, 128>}, {transform_indices = @transform_3, window_bounds = array<i64: 8, 128>}]} {
    %c0 = arith.constant 0 : index
    %c0_0 = arith.constant 0 : index
    %0 = vector.load %arg2[%c0, %c0_0] : memref<8x128xf32, #tpu.memory_space<vmem>>, vector<8x128xf32>
    %c0_1 = arith.constant 0 : index
    %c0_2 = arith.constant 0 : index
    %1 = vector.load %arg3[%c0_1, %c0_2] : memref<128x128xf32, #tpu.memory_space<vmem>>, vector<128x128xf32>
    %cst = arith.constant dense<0.000000e+00> : vector<8x128xf32>
    %2 = tpu.matmul %0, %1, %cst {dimension_numbers = #tpu.dot_dimension_numbers<[1], [1], [0], [0], [0, 0, 1, 0], [], []>} : vector<8x128xf32>, vector<128x128xf32>, vector<8x128xf32> -> vector<8x128xf32>
    %c0_3 = arith.constant 0 : index
    %c0_4 = arith.constant 0 : index
    %3 = vector.load %arg4[%c0_3, %c0_4] : memref<1x128xf32, #tpu.memory_space<vmem>>, vector<1x128xf32>
    %4 = vector.broadcast %3 : vector<1x128xf32> to vector<8x128xf32>
    %5 = arith.addf %2, %4 : vector<8x128xf32>
    %6 = math.tanh %5 : vector<8x128xf32>
    %c0_5 = arith.constant 0 : index
    %c0_6 = arith.constant 0 : index
    %7 = vector.load %arg5[%c0_5, %c0_6] : memref<8x128xf32, #tpu.memory_space<vmem>>, vector<8x128xf32>
    tpu.vector_store %arg5[%c0_5, %c0_6], %6 {strides = array<i32>} : memref<8x128xf32, #tpu.memory_space<vmem>>, vector<8x128xf32>,
    return
  }
  func.func @transform_0(%arg0: i32, %arg1: i32) -> (i32, i32) {
    %c0_i32 = arith.constant 0 : i32
    %c0_i32_0 = arith.constant 0 : i32
    return %arg0, %c0_i32 : i32, i32
  }
  func.func @transform_1(%arg0: i32, %arg1: i32) -> (i32, i32) {
    %c0_i32 = arith.constant 0 : i32
    %c0_i32_0 = arith.constant 0 : i32
    return %arg1, %c0_i32 : i32, i32
  }
  func.func @transform_2(%arg0: i32, %arg1: i32) -> (i32, i32) {
    %c0_i32 = arith.constant 0 : i32
    %c0_i32_0 = arith.constant 0 : i32
    return %c0_i32, %arg1 : i32, i32
  }
  func.func @transform_3(%arg0: i32, %arg1: i32) -> (i32, i32) {
    %c0_i32 = arith.constant 0 : i32
    return %arg0, %arg1 : i32, i32
  }
}

</mosaic_0001>

<bundles_post_ra>
// kernel: tpu_custom_call.1
= control target key start
LH: loop header
LB: loop body
LE: loop exit
PB: predicated region body
PF: predicated region fallthrough
CT: control target
= control target key end

     0   :  { %8 = vsyncpa [#allocation3], 0  ;;  %s229_s0 = inlined_call_operand.hbm [shape: f32[8,128], index: 0, kind: input, shape index: {}]   ;;  %s230_s1 = inlined_call_operand.hbm [shape: f32[128,128], index: 1, kind: input, shape index: {}]   ;;  %s231_s2 = inlined_call_operand.vmem [shape: f32[1,128], index: 2, kind: input, shape index: {}]   ;;  %s232_s3 = inlined_call_operand.hbm [shape: f32[8,128], index: 3, kind: output, shape index: {}]  }
   0x1   :  { %9 = vsyncpa [#allocation6], 0 }
   0x2   :  { %10 = vsyncpa [#allocation4], 0  ;;  %s16_s14 = sshll.u32 %s229_s0, 4  ;;  %s192_s15 = smov [#allocation2]   ;;  %s17_s14 = int_to_ptr.hbm [resolvable:$true] %s16_s14 }
   0x3   :  { %s18_s16 = sshll.u32 %s192_s15, 4  ;;  %s26_s19 = sshll.u32 %s230_s1, 4  ;;  %s19_s16 = int_to_ptr.vmem [resolvable:$true] %s18_s16  ;;  %s27_s19 = int_to_ptr.hbm [resolvable:$true] %s26_s19 }
   0x4   :  { %21 = dma.hbm_to_vmem [thread:$0]  %s17_s14, 128, %s19_s16, [#allocation3]  }
   0x5   :  { %s193_s20 = smov [#allocation5]   ;;  %s194_s22 = smov 128  }
   0x6   :  { %s28_s21 = sshll.u32 %s193_s20, 4  ;;  %s195_s23 = smov 8   ;;  %s29_s21 = int_to_ptr.vmem [resolvable:$true] %s28_s21 }
   0x7   :  { %34 = dma.hbm_to_vmem [thread:$0]  %s27_s19, 2048, %s29_s21, [#allocation6], %s194_s22, %s194_s22, %s195_s23  }
   0x8   :  { %186 = dma.done.wait [#allocation3], 128  }
   0x9   :  { %187 = vsyncadd [#allocation3], 4294967168 }
   0xa   :  { %188 = dma.done.wait [#allocation6], 2048  }
   0xb   :  { %189 = vsyncadd [#allocation6], 4294965248  ;;  %v61_v0 = vld [vmem:[#allocation5 + $0x78] sm:$0xff]  ;;  %v60_v1 = vld [vmem:[#allocation5 + $0x70] sm:$0xff]  ;;  %s196_s24 = smov [#allocation7]   ;;  %s95_s28 = sshll.u32 %s232_s3, 4  ;;  %s96_s28 = int_to_ptr.hbm [resolvable:$true] %s95_s28 }
   0xc   :  { %66 = vmatpush.xpose.msra.mxu0 %v61_v0  ;;  %v59_v2 = vld [vmem:[#allocation5 + $0x68] sm:$0xff]  ;;  %v58_v3 = vld [vmem:[#allocation5 + $0x60] sm:$0xff]  ;;  %v57_v4 = vld [vmem:[#allocation5 + $0x58] sm:$0xff]  ;;  %s93_s25 = sshll.u32 %s196_s24, 4  ;;  %s94_s25 = int_to_ptr.vmem [resolvable:$true] %s93_s25 }
   0xd   :  { %v56_v5 = vld [vmem:[#allocation5 + $0x50] sm:$0xff]  ;;  %v55_v6 = vld [vmem:[#allocation5 + $0x48] sm:$0xff]  ;;  %v54_v7 = vld [vmem:[#allocation5 + $0x40] sm:$0xff] }
   0xe   :  { %v53_v8 = vld [vmem:[#allocation5 + $0x38] sm:$0xff]  ;;  %v52_v9 = vld [vmem:[#allocation5 + $0x30] sm:$0xff]  ;;  %v51_v10 = vld [vmem:[#allocation5 + $0x28] sm:$0xff] }
   0xf   :  { %v50_v11 = vld [vmem:[#allocation5 + $0x20] sm:$0xff]  ;;  %v49_v12 = vld [vmem:[#allocation5 + $0x18] sm:$0xff]  ;;  %v48_v13 = vld [vmem:[#allocation5 + $0x10] sm:$0xff] }
  0x10   :  { %67 = vmatpush.xpose.msra.mxu0 %v60_v1  ;;  %v47_v14 = vld [vmem:[#allocation5 + $0x8] sm:$0xff]  ;;  %v46_v15 = vld [vmem:[#allocation5] sm:$0xff]  ;;  %v45_v16 = vld [vmem:[#allocation2] sm:$0xff] }
  0x11   :  { %v111_v17 = vld [vmem:[%s231_s2] ss:$0 sm:$0xff] }
  0x14   :  { %68 = vmatpush.xpose.msra.mxu0 %v59_v2 }
  0x18   :  { %69 = vmatpush.xpose.msra.mxu0 %v58_v3 }
  0x1c   :  { %70 = vmatpush.xpose.msra.mxu0 %v57_v4 }
  0x20   :  { %71 = vmatpush.xpose.msra.mxu0 %v56_v5 }
  0x24   :  { %72 = vmatpush.xpose.msra.mxu0 %v55_v6 }
  0x28   :  { %73 = vmatpush.xpose.msra.mxu0 %v54_v7 }
  0x2c   :  { %74 = vmatpush.xpose.msra.mxu0 %v53_v8 }
  0x30   :  { %75 = vmatpush.xpose.msra.mxu0 %v52_v9 }
  0x34   :  { %76 = vmatpush.xpose.msra.mxu0 %v51_v10 }
  0x38   :  { %77 = vmatpush.xpose.msra.mxu0 %v50_v11 }
  0x3c   :  { %78 = vmatpush.xpose.msra.mxu0 %v49_v12 }
  0x40   :  { %79 = vmatpush.xpose.msra.mxu0 %v48_v13 }
  0x44   :  { %80 = vmatpush.xpose.msra.mxu0 %v47_v14 }
  0x48   :  { %81 = vmatpush.xpose.msra.mxu0 %v46_v15 }
  0x4b   :  { %82 = vmatmul.f32.vlgmr.msra.gmra.mxu0 %v45_v16 }
  0xc8   :  { %v83_v18 = vpop.f32.mrf.mxu0 }
  0xc9   :  { %v84_v19 = vadd.f32 %v111_v17, %v83_v18 }
  0xcb   :  { %112 = vtanh.f32 %v84_v19 }
  0xd1   :  { %v113_v20 = vpop.eup %112 }
  0xd2   :  { %87 = vst [vmem:[#allocation7] sm:$0xff] %v113_v20 }
  0xd3   :  { %98 = dma.vmem_to_hbm [thread:$0]  %s94_s25, 128, %s96_s28, [#allocation4]  }
  0xd4   :  { %190 = dma.done.wait [#allocation4], 128  }
  0xd5   :  { %191 = vsyncadd [#allocation4], 4294967168 }
  0xd6   :  { %103 = vsyncpa [#allocation3], 1 }
  0xd7   :  { %104 = vsyncpa [#allocation6], 1 }
  0xd8   :  { %105 = vsyncpa [#allocation4], 1 }

</bundles_post_ra>
